<compile_context>
chip_gen: v7x
topology: tpu7x:2x2x1
jax: 0.10.0
libtpu: 0.0.40
codegen_flags: <defaults>
</compile_context>

<pallas_src>
import jax
import jax.numpy as jnp
import numpy as np
from jax.experimental import pallas as pl
from jax.experimental.pallas import tpu as pltpu

# efficient-KAN default hyper-parameters
GRID_SIZE = 5
SPLINE_ORDER = 3
GRID_RANGE = (-1.0, 1.0)
N_COEF = GRID_SIZE + SPLINE_ORDER           # 8  (basis functions per input feature)
N_KNOTS = GRID_SIZE + 2 * SPLINE_ORDER + 1  # 12 (extended knot vector length)
PARAM_ROWS = 2 + 4 * SPLINE_ORDER           # 14 packed parameter rows


def _round_up(n, m):
    return ((n + m - 1) // m) * m


def _make_knot_params(grid):
    """Pack per-level, lane-concatenated knot / reciprocal-denominator rows.

    Returns (PARAM_ROWS, (N_KNOTS-1)*IN) f32 with lane index j*IN + i:
      row 0 : G[i, j]          (level-0 lower knot), j = 0..N_KNOTS-2
      row 1 : G[i, j+1]        (level-0 upper knot)
      rows 2+4*(k-1) .. +3 for k = 1..SPLINE_ORDER (width (N_KNOTS-1-k)*IN, right-padded):
        +0 : G[i, j]
        +1 : 1/(G[i, j+k]   - G[i, j])
        +2 : G[i, j+k+1]
        +3 : 1/(G[i, j+k+1] - G[i, j+1])
    """
    grid_t = jnp.asarray(grid, jnp.float32).T           # (N_KNOTS, IN)
    n_knots, in_size = grid_t.shape
    w_max = (n_knots - 1) * in_size

    def pack(rows_2d):                                  # (W, IN) -> (1, w_max), right-padded
        flat = rows_2d.reshape(1, -1)
        return jnp.pad(flat, ((0, 0), (0, w_max - flat.shape[1])), constant_values=1.0)

    def safe_recip(d):
        # Clamp degenerate knot spacings (matches efficient-KAN's uniform grids).
        return 1.0 / jnp.where(jnp.abs(d) < 1e-12, 1e-12, d)

    rows = [pack(grid_t[:-1]), pack(grid_t[1:])]
    for k in range(1, SPLINE_ORDER + 1):
        w = n_knots - 1 - k
        rows.append(pack(grid_t[:w]))
        rows.append(pack(safe_recip(grid_t[k:k + w] - grid_t[:w])))
        rows.append(pack(grid_t[k + 1:k + 1 + w]))
        rows.append(pack(safe_recip(grid_t[k + 1:k + 1 + w] - grid_t[1:1 + w])))
    return jnp.concatenate(rows, axis=0)                # (PARAM_ROWS, w_max)


def _kan_encoder_kernel(x_ref, params_ref, w_ref, out_ref):
    """One (batch-tile, out-column-tile) block of the KAN linear layer.

    x_ref      : (TB, IN)                      input tile (any float dtype)
    params_ref : (PARAM_ROWS, (N_KNOTS-1)*IN)  packed knots + reciprocal denominators (f32)
    w_ref      : ((N_COEF+1)*IN, TN)           [spline ; base] weight, pre-transposed (bf16)
    out_ref    : (TB, TN)                      output tile (lane-dense)
    """
    x = x_ref[...].astype(jnp.float32)                     # (TB, IN)
    in_size = x.shape[1]

    # Replicate x across the packed coefficient blocks once (lane concat; off
    # the VALU critical path).  Lane index = j*IN + i.
    x_t = jnp.concatenate([x] * (N_KNOTS - 1), axis=1)     # (TB, (N_KNOTS-1)*IN)

    def prow(r):                                           # one packed param row, (1, W_max)
        return params_ref[r:r + 1, :]

    # Level 0: a single wide compare pair covers all N_KNOTS-1 coefficients.
    b = ((x_t >= prow(0)) & (x_t < prow(1))).astype(jnp.float32)

    # Levels 1..SPLINE_ORDER: ~6 wide VPU ops per level at full lane utilisation.
    for k in range(1, SPLINE_ORDER + 1):
        w = (N_KNOTS - 1 - k) * in_size
        r = 2 + 4 * (k - 1)
        xs = x_t[:, :w]
        left = (xs - prow(r)[:, :w]) * prow(r + 1)[:, :w]
        right = (prow(r + 2)[:, :w] - xs) * prow(r + 3)[:, :w]
        b = left * b[:, :w] + right * b[:, in_size:in_size + w]
    # b: (TB, N_COEF*IN), already g-major — matches w_ref's first N_COEF*IN rows.

    silu = x * jax.nn.sigmoid(x)                           # sigmoid -> EUP slot

    # Single fused MXU contraction over K = (N_COEF+1)*IN.
    operand = jnp.concatenate([b, silu], axis=1).astype(w_ref.dtype)
    acc = jnp.dot(operand, w_ref[...], preferred_element_type=jnp.float32)
    out_ref[...] = acc.astype(out_ref.dtype)


def kan_encoder(x, grid, base_w, spline_w_scaled, *, tile_b=512,
                matmul_dtype=jnp.bfloat16, out_dtype=jnp.float32):
    """Pallas wrapper.

    x               : (B, IN)  f32 or bf16 (upcast in-kernel)
    grid            : (IN, N_KNOTS) extended knot vector (efficient-KAN layout)
    base_w          : (OUT, IN)
    spline_w_scaled : (OUT, IN, N_COEF)   spline_weight * spline_scaler
    """
    B, IN = x.shape
    OUT = base_w.shape[0]
    assert grid.shape == (IN, N_KNOTS)
    assert spline_w_scaled.shape == (OUT, IN, N_COEF)

    # ---- one-time host-side layout work (free vs. the matmuls) ----------------
    params = _make_knot_params(grid)                        # (PARAM_ROWS, (N_KNOTS-1)*IN)
    w_rows = (N_COEF + 1) * IN
    w_itemsize = jnp.dtype(matmul_dtype).itemsize

    # Generation-aware VMEM capacity (v5e/v6e: 128 MiB, v7x: 64 MiB).
    try:
        vmem_cap = int(pltpu.get_tpu_info().vmem_capacity_bytes)
    except Exception:
        vmem_cap = 64 * 1024 * 1024

    # ---- output-column tiling: weights fully resident when they fit, otherwise
    #      tile OUT so each weight block stays inside a VMEM budget (large v7x layers).
    tile_n = _round_up(OUT, 128)
    w_budget = int(vmem_cap * 0.4)
    while tile_n > 128 and w_rows * tile_n * w_itemsize > w_budget:
        tile_n = _round_up(tile_n // 2, 128)
    OUT_P = _round_up(OUT, tile_n)
    steps_n = OUT_P // tile_n
    # TODO(synk): for very large IN a K-tiled (accumulator) path would also be needed.

    # Fused [spline ; base] weight, pre-transposed, lane-dense padded columns.
    sw = jnp.transpose(spline_w_scaled, (2, 1, 0)).reshape(N_COEF * IN, OUT)
    w_comb = jnp.concatenate([sw, jnp.asarray(base_w).T], axis=0)       # (w_rows, OUT)
    w_pad = jnp.zeros((w_rows, OUT_P), matmul_dtype).at[:, :OUT].set(
        w_comb.astype(matmul_dtype))

    # ---- batch tiling: big tiles; guarantee >=2 grid steps for v7x megacore ---
    tile = _round_up(min(int(tile_b), max(B, 1)), 8)
    if steps_n < 2 and B > 8 and _round_up(B, tile) // tile < 2:
        tile = _round_up((B + 1) // 2, 8)                   # split so both TCs get work
    B_pad = _round_up(B, tile)
    if B_pad != B:
        x = jnp.pad(x, ((0, B_pad - B), (0, 0)))
    steps_b = B_pad // tile

    # Resident operands (constant index map) only need a single buffer when large.
    resident_bytes = w_rows * tile_n * w_itemsize + params.size * 4
    single_buffer = (steps_n == 1) and resident_bytes > (8 << 20)
    res_kwargs = dict(pipeline_mode=pl.Buffered(1)) if single_buffer else {}

    # ---- explicit VMEM budget, capped by physical capacity ---------------------
    n_wbuf = 1 if single_buffer else 2
    est = (2 * tile * IN * jnp.dtype(x.dtype).itemsize          # double-buffered x tiles
           + 2 * tile * tile_n * jnp.dtype(out_dtype).itemsize  # double-buffered out tiles
           + n_wbuf * resident_bytes                            # weights + knot params
           + 4 * tile * (N_KNOTS - 1) * IN * 4                  # wide f32 intermediates
           + (4 << 20))
    vmem_limit = int(min(max(32 << 20, est), int(vmem_cap * 0.85)))

    out = pl.pallas_call(
        _kan_encoder_kernel,
        out_shape=jax.ShapeDtypeStruct((B_pad, OUT_P), out_dtype),
        grid_spec=pltpu.PrefetchScalarGridSpec(
            num_scalar_prefetch=0,
            grid=(steps_b, steps_n),
            in_specs=[
                pl.BlockSpec((tile, IN), lambda i, n: (i, 0)),               # activations
                pl.BlockSpec(params.shape, lambda i, n: (0, 0), **res_kwargs),  # knot params
                pl.BlockSpec((w_rows, tile_n), lambda i, n: (0, n), **res_kwargs),  # fused W
            ],
            out_specs=pl.BlockSpec((tile, tile_n), lambda i, n: (i, n)),
        ),
        compiler_params=pltpu.CompilerParams(
            dimension_semantics=("parallel", "parallel"),
            vmem_limit_bytes=vmem_limit,
        ),
    )(x, params, w_pad)

    return out[:B, :OUT]


def _reference_forward(x, grid, base_w, spline_w_scaled):
    """Pure-JAX (f32) mirror of efficient-KAN's KANLinear.forward, for verification."""
    xe = x[:, :, None]
    bases = ((xe >= grid[:, :-1]) & (xe < grid[:, 1:])).astype(x.dtype)
    for k in range(1, SPLINE_ORDER + 1):
        bases = (
            (xe - grid[:, : -(k + 1)]) / (grid[:, k:-1] - grid[:, : -(k + 1)]) * bases[:, :, :-1]
            + (grid[:, k + 1:] - xe) / (grid[:, k + 1:] - grid[:, 1:-k]) * bases[:, :, 1:]
        )
    base_out = jax.nn.silu(x) @ base_w.T
    spline_out = bases.reshape(x.shape[0], -1) @ spline_w_scaled.reshape(base_w.shape[0], -1).T
    return base_out + spline_out


if __name__ == "__main__":
    in_size, out_size, batch = 32, 16, 72   # small demo shapes (ragged vs. tile)

    key = jax.random.PRNGKey(0)
    k1, k2, k3, k4 = jax.random.split(key, 4)

    # Extended knot vector, identical per input feature (matches torch .expand).
    h = (GRID_RANGE[1] - GRID_RANGE[0]) / GRID_SIZE
    knots = (jnp.arange(-SPLINE_ORDER, GRID_SIZE + SPLINE_ORDER + 1, dtype=jnp.float32) * h
             + GRID_RANGE[0])
    grid = jnp.broadcast_to(knots, (in_size, N_KNOTS))

    # Deterministic synthetic parameters (shapes per efficient-KAN KANLinear).
    base_w = 0.1 * jax.random.normal(k1, (out_size, in_size), jnp.float32)
    spline_w = 0.1 * jax.random.normal(k2, (out_size, in_size, N_COEF), jnp.float32)
    spline_scaler = 1.0 + 0.1 * jax.random.normal(k3, (out_size, in_size), jnp.float32)
    spline_w_scaled = spline_w * spline_scaler[:, :, None]  # scaled_spline_weight

    x = jax.random.normal(k4, (batch, in_size), jnp.float32)

    # Small tile here so the demo exercises a multi-step grid + ragged batch padding.
    out = jax.block_until_ready(kan_encoder(x, grid, base_w, spline_w_scaled, tile_b=32))
    ref = _reference_forward(x, grid, base_w, spline_w_scaled)
    # bf16 MXU operands with f32 accumulation => loose-but-meaningful tolerance.
    np.testing.assert_allclose(np.asarray(out), np.asarray(ref), rtol=5e-2, atol=5e-2)

    print("KERNEL_OK")
</pallas_src>

<mosaic_0001>
module attributes {stable_mosaic.version = 11 : i64} {
  func.func @_kan_encoder_kernel(%arg0: i32, %arg1: i32, %arg2: memref<32x32xf32, #tpu.memory_space<vmem>>, %arg3: memref<14x352xf32, #tpu.memory_space<vmem>>, %arg4: memref<288x128xbf16, #tpu.memory_space<vmem>>, %arg5: memref<32x128xf32, #tpu.memory_space<vmem>>) attributes {dimension_semantics = [#tpu.dimension_semantics<parallel>, #tpu.dimension_semantics<parallel>], iteration_bounds = array<i64: 3, 1>, scalar_prefetch = 0 : i64, scratch_operands = 0 : i64, tpu.core_type = #tpu.core_type<tc>, window_params = [{transform_indices = @transform_0, window_bounds = array<i64: 32, 32>}, {pipeline_mode = #tpu.pipeline_mode<synchronous>, transform_indices = @transform_1, window_bounds = array<i64: 14, 352>}, {transform_indices = @transform_2, window_bounds = array<i64: 288, 128>}, {transform_indices = @transform_3, window_bounds = array<i64: 32, 128>}]} {
    %c0 = arith.constant 0 : index
    %c0_0 = arith.constant 0 : index
    %0 = vector.load %arg2[%c0, %c0_0] : memref<32x32xf32, #tpu.memory_space<vmem>>, vector<32x32xf32>
    %1 = tpu.concatenate %0, %0, %0, %0, %0, %0, %0, %0, %0, %0, %0 in 1 : vector<32x32xf32>, vector<32x32xf32>, vector<32x32xf32>, vector<32x32xf32>, vector<32x32xf32>, vector<32x32xf32>, vector<32x32xf32>, vector<32x32xf32>, vector<32x32xf32>, vector<32x32xf32>, vector<32x32xf32> -> vector<32x352xf32>
    %c0_1 = arith.constant 0 : index
    %c0_2 = arith.constant 0 : index
    %2 = vector.load %arg3[%c0_1, %c0_2] : memref<14x352xf32, #tpu.memory_space<vmem>>, vector<1x352xf32>
    %3 = vector.broadcast %2 : vector<1x352xf32> to vector<32x352xf32>
    %4 = arith.cmpf oge, %1, %3 : vector<32x352xf32>
    %c1 = arith.constant 1 : index
    %c0_3 = arith.constant 0 : index
    %5 = vector.load %arg3[%c1, %c0_3] : memref<14x352xf32, #tpu.memory_space<vmem>>, vector<1x352xf32>
    %6 = vector.broadcast %5 : vector<1x352xf32> to vector<32x352xf32>
    %7 = arith.cmpf olt, %1, %6 : vector<32x352xf32>
    %8 = arith.andi %4, %7 : vector<32x352xi1>
    %9 = arith.extui %8 : vector<32x352xi1> to vector<32x352xi32>
    %10 = arith.sitofp %9 : vector<32x352xi32> to vector<32x352xf32>
    %11 = vector.extract_strided_slice %1 {offsets = [0, 0], sizes = [32, 320], strides = [1, 1]} : vector<32x352xf32> to vector<32x320xf32>
    %c2 = arith.constant 2 : index
    %c0_4 = arith.constant 0 : index
    %12 = vector.load %arg3[%c2, %c0_4] : memref<14x352xf32, #tpu.memory_space<vmem>>, vector<1x352xf32>
    %13 = vector.extract_strided_slice %12 {offsets = [0, 0], sizes = [1, 320], strides = [1, 1]} : vector<1x352xf32> to vector<1x320xf32>
    %14 = vector.broadcast %13 : vector<1x320xf32> to vector<32x320xf32>
    %15 = arith.subf %11, %14 : vector<32x320xf32>
    %c3 = arith.constant 3 : index
    %c0_5 = arith.constant 0 : index
    %16 = vector.load %arg3[%c3, %c0_5] : memref<14x352xf32, #tpu.memory_space<vmem>>, vector<1x352xf32>
    %17 = vector.extract_strided_slice %16 {offsets = [0, 0], sizes = [1, 320], strides = [1, 1]} : vector<1x352xf32> to vector<1x320xf32>
    %18 = vector.broadcast %17 : vector<1x320xf32> to vector<32x320xf32>
    %19 = arith.mulf %15, %18 : vector<32x320xf32>
    %c4 = arith.constant 4 : index
    %c0_6 = arith.constant 0 : index
    %20 = vector.load %arg3[%c4, %c0_6] : memref<14x352xf32, #tpu.memory_space<vmem>>, vector<1x352xf32>
    %21 = vector.extract_strided_slice %20 {offsets = [0, 0], sizes = [1, 320], strides = [1, 1]} : vector<1x352xf32> to vector<1x320xf32>
    %22 = vector.broadcast %21 : vector<1x320xf32> to vector<32x320xf32>
    %23 = arith.subf %22, %11 : vector<32x320xf32>
    %c5 = arith.constant 5 : index
    %c0_7 = arith.constant 0 : index
    %24 = vector.load %arg3[%c5, %c0_7] : memref<14x352xf32, #tpu.memory_space<vmem>>, vector<1x352xf32>
    %25 = vector.extract_strided_slice %24 {offsets = [0, 0], sizes = [1, 320], strides = [1, 1]} : vector<1x352xf32> to vector<1x320xf32>
    %26 = vector.broadcast %25 : vector<1x320xf32> to vector<32x320xf32>
    %27 = arith.mulf %23, %26 : vector<32x320xf32>
    %28 = vector.extract_strided_slice %10 {offsets = [0, 0], sizes = [32, 320], strides = [1, 1]} : vector<32x352xf32> to vector<32x320xf32>
    %29 = arith.mulf %19, %28 : vector<32x320xf32>
    %30 = vector.extract_strided_slice %10 {offsets = [0, 32], sizes = [32, 320], strides = [1, 1]} : vector<32x352xf32> to vector<32x320xf32>
    %31 = arith.mulf %27, %30 : vector<32x320xf32>
    %32 = arith.addf %29, %31 : vector<32x320xf32>
    %33 = vector.extract_strided_slice %1 {offsets = [0, 0], sizes = [32, 288], strides = [1, 1]} : vector<32x352xf32> to vector<32x288xf32>
    %c6 = arith.constant 6 : index
    %c0_8 = arith.constant 0 : index
    %34 = vector.load %arg3[%c6, %c0_8] : memref<14x352xf32, #tpu.memory_space<vmem>>, vector<1x352xf32>
    %35 = vector.extract_strided_slice %34 {offsets = [0, 0], sizes = [1, 288], strides = [1, 1]} : vector<1x352xf32> to vector<1x288xf32>
    %36 = vector.broadcast %35 : vector<1x288xf32> to vector<32x288xf32>
    %37 = arith.subf %33, %36 : vector<32x288xf32>
    %c7 = arith.constant 7 : index
    %c0_9 = arith.constant 0 : index
    %38 = vector.load %arg3[%c7, %c0_9] : memref<14x352xf32, #tpu.memory_space<vmem>>, vector<1x352xf32>
    %39 = vector.extract_strided_slice %38 {offsets = [0, 0], sizes = [1, 288], strides = [1, 1]} : vector<1x352xf32> to vector<1x288xf32>
    %40 = vector.broadcast %39 : vector<1x288xf32> to vector<32x288xf32>
    %41 = arith.mulf %37, %40 : vector<32x288xf32>
    %c8 = arith.constant 8 : index
    %c0_10 = arith.constant 0 : index
    %42 = vector.load %arg3[%c8, %c0_10] : memref<14x352xf32, #tpu.memory_space<vmem>>, vector<1x352xf32>
    %43 = vector.extract_strided_slice %42 {offsets = [0, 0], sizes = [1, 288], strides = [1, 1]} : vector<1x352xf32> to vector<1x288xf32>
    %44 = vector.broadcast %43 : vector<1x288xf32> to vector<32x288xf32>
    %45 = arith.subf %44, %33 : vector<32x288xf32>
    %c9 = arith.constant 9 : index
    %c0_11 = arith.constant 0 : index
    %46 = vector.load %arg3[%c9, %c0_11] : memref<14x352xf32, #tpu.memory_space<vmem>>, vector<1x352xf32>
    %47 = vector.extract_strided_slice %46 {offsets = [0, 0], sizes = [1, 288], strides = [1, 1]} : vector<1x352xf32> to vector<1x288xf32>
    %48 = vector.broadcast %47 : vector<1x288xf32> to vector<32x288xf32>
    %49 = arith.mulf %45, %48 : vector<32x288xf32>
    %50 = vector.extract_strided_slice %32 {offsets = [0, 0], sizes = [32, 288], strides = [1, 1]} : vector<32x320xf32> to vector<32x288xf32>
    %51 = arith.mulf %41, %50 : vector<32x288xf32>
    %52 = vector.extract_strided_slice %32 {offsets = [0, 32], sizes = [32, 288], strides = [1, 1]} : vector<32x320xf32> to vector<32x288xf32>
    %53 = arith.mulf %49, %52 : vector<32x288xf32>
    %54 = arith.addf %51, %53 : vector<32x288xf32>
    %55 = vector.extract_strided_slice %1 {offsets = [0, 0], sizes = [32, 256], strides = [1, 1]} : vector<32x352xf32> to vector<32x256xf32>
    %c10 = arith.constant 10 : index
    %c0_12 = arith.constant 0 : index
    %56 = vector.load %arg3[%c10, %c0_12] : memref<14x352xf32, #tpu.memory_space<vmem>>, vector<1x352xf32>
    %57 = vector.extract_strided_slice %56 {offsets = [0, 0], sizes = [1, 256], strides = [1, 1]} : vector<1x352xf32> to vector<1x256xf32>
    %58 = vector.broadcast %57 : vector<1x256xf32> to vector<32x256xf32>
    %59 = arith.subf %55, %58 : vector<32x256xf32>
    %c11 = arith.constant 11 : index
    %c0_13 = arith.constant 0 : index
    %60 = vector.load %arg3[%c11, %c0_13] : memref<14x352xf32, #tpu.memory_space<vmem>>, vector<1x352xf32>
    %61 = vector.extract_strided_slice %60 {offsets = [0, 0], sizes = [1, 256], strides = [1, 1]} : vector<1x352xf32> to vector<1x256xf32>
    %62 = vector.broadcast %61 : vector<1x256xf32> to vector<32x256xf32>
    %63 = arith.mulf %59, %62 : vector<32x256xf32>
    %c12 = arith.constant 12 : index
    %c0_14 = arith.constant 0 : index
    %64 = vector.load %arg3[%c12, %c0_14] : memref<14x352xf32, #tpu.memory_space<vmem>>, vector<1x352xf32>
    %65 = vector.extract_strided_slice %64 {offsets = [0, 0], sizes = [1, 256], strides = [1, 1]} : vector<1x352xf32> to vector<1x256xf32>
    %66 = vector.broadcast %65 : vector<1x256xf32> to vector<32x256xf32>
    %67 = arith.subf %66, %55 : vector<32x256xf32>
    %c13 = arith.constant 13 : index
    %c0_15 = arith.constant 0 : index
    %68 = vector.load %arg3[%c13, %c0_15] : memref<14x352xf32, #tpu.memory_space<vmem>>, vector<1x352xf32>
    %69 = vector.extract_strided_slice %68 {offsets = [0, 0], sizes = [1, 256], strides = [1, 1]} : vector<1x352xf32> to vector<1x256xf32>
    %70 = vector.broadcast %69 : vector<1x256xf32> to vector<32x256xf32>
    %71 = arith.mulf %67, %70 : vector<32x256xf32>
    %72 = vector.extract_strided_slice %54 {offsets = [0, 0], sizes = [32, 256], strides = [1, 1]} : vector<32x288xf32> to vector<32x256xf32>
    %73 = arith.mulf %63, %72 : vector<32x256xf32>
    %74 = vector.extract_strided_slice %54 {offsets = [0, 32], sizes = [32, 256], strides = [1, 1]} : vector<32x288xf32> to vector<32x256xf32>
    %75 = arith.mulf %71, %74 : vector<32x256xf32>
    %76 = arith.addf %73, %75 : vector<32x256xf32>
    %77 = arith.negf %0 : vector<32x32xf32>
    %78 = math.exp %77 : vector<32x32xf32>
    %cst = arith.constant 1.000000e+00 : f32
    %79 = vector.broadcast %cst : f32 to vector<32x32xf32>
    %80 = arith.addf %79, %78 : vector<32x32xf32>
    %81 = arith.divf %79, %80 : vector<32x32xf32>
    %82 = arith.mulf %0, %81 : vector<32x32xf32>
    %83 = tpu.concatenate %76, %82 in 1 : vector<32x256xf32>, vector<32x32xf32> -> vector<32x288xf32>
    %84 = arith.truncf %83 : vector<32x288xf32> to vector<32x288xbf16>
    %c0_16 = arith.constant 0 : index
    %c0_17 = arith.constant 0 : index
    %85 = vector.load %arg4[%c0_16, %c0_17] : memref<288x128xbf16, #tpu.memory_space<vmem>>, vector<288x128xbf16>
    %cst_18 = arith.constant dense<0.000000e+00> : vector<32x128xf32>
    %86 = tpu.matmul %84, %85, %cst_18 {dimension_numbers = #tpu.dot_dimension_numbers<[1], [0], [0], [1], [0, 0, 1, 1], [], []>} : vector<32x288xbf16>, vector<288x128xbf16>, vector<32x128xf32> -> vector<32x128xf32>
    %c0_19 = arith.constant 0 : index
    %c0_20 = arith.constant 0 : index
    %87 = vector.load %arg5[%c0_19, %c0_20] : memref<32x128xf32, #tpu.memory_space<vmem>>, vector<32x128xf32>
    tpu.vector_store %arg5[%c0_19, %c0_20], %86 {strides = array<i32>} : memref<32x128xf32, #tpu.memory_space<vmem>>, vector<32x128xf32>,
    return
  }
  func.func @transform_0(%arg0: i32, %arg1: i32) -> (i32, i32) {
    %c0_i32 = arith.constant 0 : i32
    %c0_i32_0 = arith.constant 0 : i32
    return %arg0, %c0_i32 : i32, i32
  }
  func.func @transform_1(%arg0: i32, %arg1: i32) -> (i32, i32) {
    %c0_i32 = arith.constant 0 : i32
    %c0_i32_0 = arith.constant 0 : i32
    %c0_i32_1 = arith.constant 0 : i32
    return %c0_i32, %c0_i32_0 : i32, i32
  }
  func.func @transform_2(%arg0: i32, %arg1: i32) -> (i32, i32) {
    %c0_i32 = arith.constant 0 : i32
    %c0_i32_0 = arith.constant 0 : i32
    return %c0_i32, %arg1 : i32, i32
  }
  func.func @transform_3(%arg0: i32, %arg1: i32) -> (i32, i32) {
    %c0_i32 = arith.constant 0 : i32
    return %arg0, %arg1 : i32, i32
  }
}

</mosaic_0001>

<bundles_post_ra>
// kernel: tpu_custom_call.1
= control target key start
LH: loop header
LB: loop body
LE: loop exit
PB: predicated region body
PF: predicated region fallthrough
CT: control target
= control target key end

     0   :  { %8 = vsyncpa [#allocation3], 0  ;;  %s2660_s0 = inlined_call_operand.vmem [shape: f32[96,32], index: 0, kind: input, shape index: {}]   ;;  %s2661_s1 = inlined_call_operand.vmem [shape: f32[14,352], index: 1, kind: input, shape index: {}]   ;;  %s2662_s2 = inlined_call_operand.hbm [shape: bf16[288,128], index: 2, kind: input, shape index: {}]   ;;  %s2663_s3 = inlined_call_operand.hbm [shape: f32[96,128], index: 3, kind: output, shape index: {}]  }
   0x1   :  { %9 = vsyncpa [#allocation4], 0 }
   0x2   :  { %11 = vsyncpa [#allocation4 + $0x1], 0  ;;  %s1723_s12 = smov 0   ;;  %s1725_s13 = smov 0  }
   0x3   :  { %s1727_s14 = smov 0   ;;  %s1729_s15 = smov 0  }
   0x4   :  { %s1731_s16 = smov 0   ;;  %s1733_s17 = smov 0  }
   0x5 LB: > { %s1334_s18 = sadd.s32 4294967295, %s1691_s17   ;;  %s1335_s19 = sadd.s32 4294967294, %s1691_s17   ;;  %s1691_s17 = sphi %s1733_s17, %s17_s17   ;;  %s1687_s16 = sphi %s1731_s16, %s2732_s16   ;;  %s1683_s15 = sphi %s1729_s15, %s2731_s15   ;;  %s1679_s14 = sphi %s1727_s14, %s2730_s14   ;;  %s1675_s13 = sphi %s1725_s13, %s2729_s13   ;;  %s1671_s12 = sphi %s1723_s12, %s2728_s12  }
   0x6   : > { %s29_s20 = sadd.s32 1, %s1687_s16  ;;  %s111_s21 = sadd.s32 1, %s1679_s14 }
   0x7   : > { %p31_p0 = scmp.ge.s32.totalorder %s29_s20, 3  ;;  %p121_p1 = scmp.ne.s32.totalorder %s1679_s14, %s1675_s13 }
   0x8   : > { %p122_p2 = scmp.eq.s32.totalorder %s1334_s18, 2  ;;  %p127_p3 = scmp.ne.s32.totalorder %s1675_s13, %s1671_s12 }
   0x9   : > { %s2734_s20 = smov (%p31_p0, %s29_s20), 0  ;;  %p128_p5 = scmp.eq.s32.totalorder %s1335_s19, 2 }
   0xa   : > { %p1763_p4 = por %p122_p2, %p121_p1  ;;  %s106_s23 = ssub.s32 %s1687_s16, %s2734_s20 }
   0xb   : > { %p1336_p6 = scmp.ge.s32.totalorder %s1691_s17, 1  ;;  %p109_p7 = scmp.eq.s32.totalorder %s106_s23, 0 }
   0xc   : > { %s2674_s22 = scalar_select %p1763_p4, 1, 0 }
   0xd   : > { %p1770_p8 = por %p128_p5, %p127_p3  ;;  %p135_p9 = scmp.lt.s32.totalorder %s1691_s17, 4 }
   0xe   : > { %s1776_s25 = scalar_select %p109_p7, %s1679_s14, %s111_s21  }
   0xf   : > { %s2675_s24 = scalar_select %p1770_p8, 1, 0 }
  0x10   : > { %p1778_p10 = pnand %p1336_p6, %p135_p9  ;;  %p1782_p11 = scmp.eq.s32.totalorder %s1334_s18, 0 }
  0x11   : > { %s1693_s28 = smov [#allocation2]   ;;  %s1581_s6 = scalar_lea.hbm %s2662_s2, 2304 }
  0x12   : > { %s2676_s26 = scalar_select %p1778_p10, 1, 0 }
  0x13   : > { %s2677_s27 = scalar_select %p1782_p11, 1, 0 }
  0x14   : > { %p1445_p12 = pneg %p1778_p10  ;;  %s152_s29 = sshll.u32 %s1693_s28, 4  ;;  %s153_s29 = int_to_ptr.vmem [resolvable:$true] %s152_s29 }
  0x15   : > { %p1582_p0 = scmp.ne.s32.totalorder %s2662_s2, %s1581_s6  ;;  %p1588_p5 = scmp.lt.u32.totalorder %s1581_s6, %s2662_s2 }
  0x16   : > { %p1790_p13 = pnand %p1782_p11, %p1445_p12 }
  0x18   : > { %p1583_p1 = pneg %p1790_p13 }
  0x1a   : > { %p1584_p2 = pnand %p1583_p1, %p1582_p0 }
  0x1c   : > { %p1585_p3 = pneg %p1584_p2 }
  0x1e   : > { %p1590_p6 = pnand %p1588_p5, %p1585_p3 }
  0x20   : > { %1593 = shalt.err (!%p1590_p6)
}
  0x21   : > { %s1594_s11 = scalar_lea.vmem %s153_s29, 2304  ;;  %p1602_p8 = scmp.lt.s32.totalorder %s153_s29, %s153_s29 }
  0x22   : > { %p1595_p7 = scmp.ne.s32.totalorder %s153_s29, %s1594_s11  ;;  %p1603_p4 = scmp.lt.s32.totalorder %s1594_s11, %s1594_s11 }
  0x24   : > { %p1597_p9 = pnand %p1595_p7, %p1583_p1  ;;  %p1604_p11 = por %p1603_p4, %p1602_p8 }
  0x26   : > { %p1598_p12 = pneg %p1597_p9 }
  0x28   : > { %p1605_p10 = pnand %p1604_p11, %p1598_p12 }
  0x2a   : > { %1608 = shalt.err (!%p1605_p10)
}
  0x2b   : > { %s1694_s18 = smov 64   ;;  %s1695_s19 = smov 4  }
  0x2c   : > { %1448 = dma.hbm_to_vmem [thread:$0]  (!%p1790_p13), %s2662_s2, 2304, %s153_s29, [#allocation3], %s1694_s18, %s1694_s18, %s1695_s19  }
  0x2d   : > { %p2679_p0 = scmp.ne.s32.totalorder %s2676_s26, 0 }
  0x2f   : > { %177 = sbr.rel (%p2679_p0) target bundleno = 815 (0x32f), region = 32 }
  0x36   : > { %p2680_p2 = scmp.ne.s32.totalorder %s2677_s27, 0 }
  0x38   : > { %1662 = dma.done.wait (%p2680_p2), [#allocation3], 2304  }
  0x39   : > { %1664 = vsyncadd (%p2680_p2), [#allocation3], 4294964992  ;;  %s1342_s28 = sshll.u32 %s1683_s15, 2  ;;  %s1696_s26 = smov 64   ;;  %v270_v4 = vlaneseq  ;;  %vm253_vm0 = vcmask 261120   ;;  %vm258_vm1 = vcmask 523264  }
  0x3a   : > { %p202_p4 = scmp.lt.s32.totalorder %s1342_s28, 11  ;;  %s1697_s27 = smov 32   ;;  %v268_v9 = vld [vmem:[%s2661_s1] ss:$8 sm:$0x7]  ;;  %vm263_vm2 = vcmask 785408  }
  0x3b   : > { %s1698_s29 = smov 96   ;;  %v271_v5 = vshrl.u32 %v270_v4, 7  ;;  %v1344_v10 = vld [vmem:[%s2661_s1 + $0x1] ss:$8 sm:$0x7]  ;;  %s1398_s7 = sshll.u32 %s1683_s15, 9 }
  0x3c   : > { %s2736_s28 = smov (!%p202_p4, %s1342_s28), 11  ;;  %v1359_v11 = vld [vmem:[%s2661_s1 + $0x4] ss:$8 sm:$0x7]  ;;  %s2612_s10 = scalar_lea.hbm %s2663_s3, %s1398_s7 }
  0x3d   : > { %s1343_s4 = sshll.u32 %s2736_s28, 3  ;;  %v1850_v6 = vsub.s32 0, %v271_v5  ;;  %v1852_v7 = vsub.s32 1, %v271_v5  ;;  %v280_v8 = vsub.s32 2, %v271_v5  ;;  %p2726_p10 = scmp.ne.s32.totalorder %s2674_s22, 0 }
  0x3e   : > { %s1820_s6 = scalar_lea.vmem %s2660_s0, %s1343_s4  ;;  %v1360_v12 = vld [vmem:[%s2661_s1 + $0x5] ss:$8 sm:$0x7]  ;;  %v1357_v13 = vld [vmem:[%s2661_s1 + $0x2] ss:$8 sm:$0x7] }
  0x3f   : > { %v1823_v0 = vld [vmem:[%s1820_s6] sm:$0xff]  ;;  %v1828_v1 = vld [vmem:[%s1820_s6 + $0x8] sm:$0xff]  ;;  %v1833_v2 = vld [vmem:[%s1820_s6 + $0x18] sm:$0xff]  ;;  %v1873_v15 = vrot.slane %v268_v9, %v1852_v7  ;;  %v1875_v16 = vrot.slane %v268_v9, %v280_v8  ;;  %v1878_v17 = vrot.slane %v1344_v10, %v1852_v7  ;;  %v1880_v18 = vrot.slane %v1344_v10, %v280_v8  ;;  %s1700_s15 = smov [#allocation5]  }
  0x40   : > { %2681 = vst [vmem:[#allocation8_spill] sm:$0xff] %v1823_v0  ;;  %229 = vrot.lane.b32.xlu1 %v1823_v0, %s1696_s26  ;;  %217 = vrot.lane.b32.xlu0 %v1823_v0, %s1697_s27  ;;  %2682 = vst [vmem:[#allocation9_spill] sm:$0xff] %v1828_v1  ;;  %v1836_v3 = vld [vmem:[%s1820_s6 + $0x10] sm:$0xff]  ;;  %v1883_v19 = vrot.slane %v268_v9, %v1850_v6  ;;  %v1886_v20 = vrot.slane %v1344_v10, %v1850_v6  ;;  %v1363_v29 = vld [vmem:[%s2661_s1 + $0x18] ss:$8 sm:$0x7] }
  0x41   : > { %2683 = vst [vmem:[#allocation10_spill] sm:$0xff] %v1833_v2  ;;  %2684 = vst [vmem:[#allocation11_spill] sm:$0xff] %v1836_v3  ;;  %v1358_v14 = vld [vmem:[%s2661_s1 + $0x3] ss:$8 sm:$0x7]  ;;  %v1888_v21 = vrot.slane %v1359_v11, %v280_v8  ;;  %v1890_v22 = vrot.slane %v1360_v12, %v280_v8  ;;  %v1898_v25 = vrot.slane %v1357_v13, %v280_v8  ;;  %s1613_s19 = sshll.u32 %s1700_s15, 4  ;;  %s1614_s19 = int_to_ptr.vmem [resolvable:$false] %s1613_s19 }
  0x42   : > { %v1361_v23 = vld [vmem:[%s2661_s1 + $0x6] ss:$8 sm:$0x7]  ;;  %v1362_v24 = vld [vmem:[%s2661_s1 + $0x7] ss:$8 sm:$0x7]  ;;  %v1900_v26 = vrot.slane %v1358_v14, %v280_v8  ;;  %v1903_v27 = vrot.slane %v1357_v13, %v1852_v7  ;;  %v1906_v28 = vrot.slane %v1359_v11, %v1852_v7  ;;  %v1915_v31 = vrot.slane %v1358_v14, %v1852_v7 }
  0x43   : > { %v1364_v30 = vld [vmem:[%s2661_s1 + $0x19] ss:$8 sm:$0x7]  ;;  %v1918_v32 = vrot.slane %v1360_v12, %v1852_v7  ;;  %v1921_v33 = vrot.slane %v1357_v13, %v1850_v6  ;;  %v1924_v34 = vrot.slane %v1358_v14, %v1850_v6  ;;  %v1365_v35 = vld [vmem:[%s2661_s1 + $0x1a] ss:$8 sm:$0x7]  ;;  %v1930_v36 = vrot.slane %v1359_v11, %v1850_v6 }
  0x44   : > { %231 = vrot.lane.b32.xlu1 %v1828_v1, %s1696_s26  ;;  %219 = vrot.lane.b32.xlu0 %v1828_v1, %s1697_s27  ;;  %v1933_v37 = vrot.slane %v1360_v12, %v1850_v6  ;;  %v1935_v38 = vrot.slane %v1361_v23, %v280_v8  ;;  %v1937_v39 = vrot.slane %v1362_v24, %v280_v8  ;;  %v1366_v44 = vld [vmem:[%s2661_s1 + $0x1b] ss:$8 sm:$0x7]  ;;  %v1367_v55 = vld [vmem:[%s2661_s1 + $0x1c] ss:$8 sm:$0x7] }
  0x45   : > { %v1939_v40 = vrot.slane %v1363_v29, %v280_v8  ;;  %v1941_v41 = vrot.slane %v1364_v30, %v280_v8  ;;  %v1944_v42 = vrot.slane %v1363_v29, %v1852_v7  ;;  %v1947_v43 = vrot.slane %v1364_v30, %v1852_v7  ;;  %v1368_v62 = vld [vmem:[%s2661_s1 + $0x1d] ss:$8 sm:$0x7]  ;;  %s1615_s21 = scalar_lea.vmem %s1614_s19, 1024 }
  0x46   : > { %v1953_v47 = vrot.slane %v1361_v23, %v1852_v7  ;;  %v1956_v48 = vrot.slane %v1363_v29, %v1850_v6  ;;  %v1959_v49 = vrot.slane %v1361_v23, %v1850_v6  ;;  %v1962_v50 = vrot.slane %v1365_v35, %v1850_v6 }
  0x47   : > { %v1967_v52 = vrot.slane %v1362_v24, %v1852_v7  ;;  %v1970_v53 = vrot.slane %v1364_v30, %v1850_v6  ;;  %v1973_v54 = vrot.slane %v1362_v24, %v1850_v6  ;;  %v1980_v57 = vrot.slane %v1366_v44, %v1850_v6 }
  0x48   : > { %243 = vrot.lane.b32.xlu1 %v1828_v1, %s1698_s29  ;;  %241 = vrot.lane.b32.xlu0 %v1823_v0, %s1698_s29  ;;  %v1983_v58 = vrot.slane %v1365_v35, %v1852_v7  ;;  %v1986_v59 = vrot.slane %v1366_v44, %v1852_v7  ;;  %v1998_v9 = vrot.slane %v1367_v55, %v1852_v7  ;;  %v2672_v12 = vmov 0.0  }
  0x49   : > { %v2001_v10 = vrot.slane %v1367_v55, %v1850_v6  ;;  %v2020_v35 = vrot.slane %v1368_v62, %v1852_v7 }
  0x4c   : > { %223 = vrot.lane.b32.xlu1 %v1833_v2, %s1697_s27  ;;  %221 = vrot.lane.b32.xlu0 %v1836_v3, %s1697_s27 }
  0x50   : > { %235 = vrot.lane.b32.xlu1 %v1833_v2, %s1696_s26  ;;  %233 = vrot.lane.b32.xlu0 %v1836_v3, %s1696_s26 }
  0x54   : > { %247 = vrot.lane.b32.xlu1 %v1833_v2, %s1698_s29  ;;  %245 = vrot.lane.b32.xlu0 %v1836_v3, %s1698_s29 }
  0xb2   : > { %v230_v45 = vpop.permute.xlu1 %229  ;;  %v218_v46 = vpop.permute.xlu0 %217 }
  0xb3   : > { %v254_v51 = vsel %vm253_vm0, %v1823_v0, %v218_v46 }
  0xb4   : > { %v259_v56 = vsel %vm258_vm1, %v254_v51, %v230_v45 }
  0xb5   : > { %vm287_vm3 = vcmp.ge.f32.partialorder %v259_v56, %v1875_v16  ;;  %vm317_vm4 = vcmp.lt.f32.partialorder %v259_v56, %v1880_v18  ;;  %v443_v60 = vsub.f32 %v1888_v21, %v259_v56  ;;  %v383_v61 = vsub.f32 %v259_v56, %v1898_v25 }
  0xb6   : > { %v232_v63 = vpop.permute.xlu1 %231  ;;  %v220_v4 = vpop.permute.xlu0 %219  ;;  %vm329_vm5 = vmand %vm287_vm3, %vm317_vm4  ;;  %v595_v5 = vsub.f32 %v259_v56, %v1935_v38  ;;  %v655_v8 = vsub.f32 %v1939_v40, %v259_v56 }
  0xb7   : > { %v255_v11 = vsel %vm253_vm0, %v1828_v1, %v220_v4  ;;  %v1347_v13 = vsel %vm329_vm5, 1.0, %v2672_v12  ;;  %v2007_v14 = vmul.f32 %v1890_v22, %v443_v60  ;;  %v413_v23 = vmul.f32 %v1900_v26, %v383_v61 }
  0xb8   : > { %v2011_v24 = vsel %vm258_vm1, %v255_v11, %v232_v63  ;;  %v2014_v29 = vmul.f32 %v1937_v39, %v595_v5  ;;  %v2017_v30 = vmul.f32 %v1941_v41, %v655_v8  ;;  %v2037_v61 = vrot.slane %v1368_v62, %v1850_v6 }
  0xb9   : > { %vm290_vm6 = vcmp.ge.f32.partialorder %v2011_v24, %v1875_v16  ;;  %vm320_vm7 = vcmp.lt.f32.partialorder %v2011_v24, %v1880_v18  ;;  %v446_v44 = vsub.f32 %v1888_v21, %v2011_v24  ;;  %v2028_v45 = vmul.f32 %v1347_v13, %v413_v23 }
  0xba   : > { %2685 = vst [vmem:[#allocation12_spill] sm:$0xff] %v2014_v29  ;;  %2686 = vst [vmem:[#allocation13_spill] sm:$0xff] %v2017_v30  ;;  %v244_v46 = vpop.permute.xlu1 %243  ;;  %v242_v51 = vpop.permute.xlu0 %241  ;;  %v386_v55 = vsub.f32 %v2011_v24, %v1898_v25 }
  0xbb   : > { %2687 = vst [vmem:[#allocation14_spill] sm:$0xff] %v2028_v45  ;;  %vm332_vm8 = vmand %vm290_vm6, %vm320_vm7  ;;  %v2041_v63 = vsel %vm263_vm2, %v2011_v24, %v244_v46  ;;  %v2044_v4 = vsel %vm263_vm2, %v259_v56, %v242_v51  ;;  %v2048_v8 = vmul.f32 %v1890_v22, %v446_v44 }
  0xbc   : > { %v1350_v5 = vsel %vm332_vm8, 1.0, %v2672_v12  ;;  %vm289_vm9 = vcmp.ge.f32.partialorder %v2041_v63, %v1873_v15  ;;  %vm319_vm10 = vcmp.lt.f32.partialorder %v2041_v63, %v1878_v17  ;;  %vm286_vm11 = vcmp.ge.f32.partialorder %v2044_v4, %v1873_v15 }
  0xbd   : > { %vm316_vm12 = vcmp.lt.f32.partialorder %v2044_v4, %v1878_v17  ;;  %vm331_vm13 = vmand %vm289_vm9, %vm319_vm10  ;;  %vm285_vm14 = vcmp.ge.f32.partialorder %v2044_v4, %v1883_v19  ;;  %vm288_vm15 = vcmp.ge.f32.partialorder %v2041_v63, %v1883_v19  ;;  %vm315_vm3 = vcmp.lt.f32.partialorder %v2044_v4, %v1886_v20 }
  0xbe   : > { %vm318_vm4 = vcmp.lt.f32.partialorder %v2041_v63, %v1886_v20  ;;  %v224_v6 = vpop.permute.xlu1 %223  ;;  %v222_v56 = vpop.permute.xlu0 %221  ;;  %v1349_v62 = vsel %vm331_vm13, 1.0, %v2672_v12  ;;  %vm328_vm5 = vmand %vm286_vm11, %vm316_vm12  ;;  %v382_v11 = vsub.f32 %v2044_v4, %v1903_v27  ;;  %v442_v23 = vsub.f32 %v1906_v28, %v2044_v4 }
  0xbf   : > { %v416_v44 = vmul.f32 %v1900_v26, %v386_v55  ;;  %v257_v46 = vsel %vm253_vm0, %v1833_v2, %v224_v6  ;;  %v256_v51 = vsel %vm253_vm0, %v1836_v3, %v222_v56  ;;  %v1518_v60 = vpack.i.bf16 %v1350_v5, %v1349_v62  ;;  %vm327_vm6 = vmand %vm285_vm14, %vm315_vm3 }
  0xc0   : > { %v1346_v7 = vsel %vm328_vm5, 1.0, %v2672_v12  ;;  %vm330_vm7 = vmand %vm288_vm15, %vm318_vm4  ;;  %v1345_v55 = vsel %vm327_vm6, 1.0, %v2672_v12  ;;  %v412_v0 = vmul.f32 %v1915_v31, %v382_v11  ;;  %v2086_v6 = vmul.f32 %v1918_v32, %v442_v23 }
  0xc1   : > { %v1513_v1 = vpack.i.bf16 %v1347_v13, %v1346_v7  ;;  %1519 = vrot.lane.b32.xlu1 %v1518_v60, %s1698_s29  ;;  %v2090_v56 = vsel %vm330_vm7, 1.0, %v2672_v12  ;;  %v2092_v2 = vmul.f32 %v1350_v5, %v416_v44  ;;  %v385_v13 = vsub.f32 %v2041_v63, %v1903_v27 }
  0xc2   : > { %v445_v3 = vsub.f32 %v1906_v28, %v2041_v63  ;;  %v236_v30 = vpop.permute.xlu1 %235  ;;  %v234_v11 = vpop.permute.xlu0 %233  ;;  %v1523_v23 = vpack.i.bf16 %v2090_v56, %v1345_v55  ;;  %v2100_v29 = vmul.f32 %v1346_v7, %v412_v0  ;;  %v381_v60 = vsub.f32 %v2044_v4, %v1921_v33 }
  0xc3   : > { %1514 = vrot.lane.b32.xlu0 %v1513_v1, %s1698_s29  ;;  %v441_v5 = vsub.f32 %v1930_v36, %v2044_v4  ;;  %v2107_v44 = vsel %vm258_vm1, %v257_v46, %v236_v30  ;;  %v2110_v12 = vsel %vm258_vm1, %v256_v51, %v234_v11  ;;  %v415_v1 = vmul.f32 %v1915_v31, %v385_v13 }
  0xc4   : > { %v2114_v45 = vmul.f32 %v1918_v32, %v445_v3  ;;  %vm296_vm8 = vcmp.ge.f32.partialorder %v2107_v44, %v1875_v16  ;;  %vm326_vm9 = vcmp.lt.f32.partialorder %v2107_v44, %v1880_v18  ;;  %vm293_vm10 = vcmp.ge.f32.partialorder %v2110_v12, %v1875_v16 }
  0xc5   : > { %vm323_vm11 = vcmp.lt.f32.partialorder %v2110_v12, %v1880_v18  ;;  %vm338_vm12 = vmand %vm296_vm8, %vm326_vm9  ;;  %v449_v0 = vsub.f32 %v1888_v21, %v2110_v12  ;;  %v452_v3 = vsub.f32 %v1888_v21, %v2107_v44  ;;  %v2128_v30 = vmul.f32 %v1349_v62, %v415_v1 }
  0xc6   : > { %v411_v7 = vmul.f32 %v1924_v34, %v381_v60  ;;  %v248_v46 = vpop.permute.xlu1 %247  ;;  %v246_v51 = vpop.permute.xlu0 %245  ;;  %v2688_v13 = vmov 0.0   ;;  %vm335_vm1 = vmand %vm293_vm10, %vm323_vm11  ;;  %v2134_v18 = vmul.f32 %v1933_v37, %v441_v5  ;;  %v389_v11 = vsub.f32 %v2110_v12, %v1898_v25 }
  0xc7   : > { %1524 = vrot.lane.b32.xlu0 %v1523_v23, %s1698_s29  ;;  %v1356_v16 = vsel %vm338_vm12, 1.0, %v2688_v13  ;;  %v384_v21 = vsub.f32 %v2041_v63, %v1921_v33  ;;  %v2142_v62 = vsel %vm263_vm2, %v2107_v44, %v248_v46  ;;  %v2146_v23 = vsel %vm263_vm2, %v2110_v12, %v246_v51 }
  0xc8   : > { %2689 = vst [vmem:[#allocation15_spill] sm:$0xff] %v2134_v18  ;;  %v1353_v60 = vsel %vm335_vm1, 1.0, %v2688_v13  ;;  %v2150_v1 = vmul.f32 %v1890_v22, %v449_v0  ;;  %vm295_vm13 = vcmp.ge.f32.partialorder %v2142_v62, %v1873_v15  ;;  %vm325_vm14 = vcmp.lt.f32.partialorder %v2142_v62, %v1878_v17 }
  0xc9   : > { %vm292_vm15 = vcmp.ge.f32.partialorder %v2146_v23, %v1873_v15  ;;  %vm322_vm3 = vcmp.lt.f32.partialorder %v2146_v23, %v1878_v17  ;;  %vm337_vm4 = vmand %vm295_vm13, %vm325_vm14  ;;  %vm291_vm5 = vcmp.ge.f32.partialorder %v2146_v23, %v1883_v19  ;;  %vm294_vm6 = vcmp.ge.f32.partialorder %v2142_v62, %v1883_v19 }
  0xca   : > { %2690 = vst [vmem:[#allocation16_spill] sm:$0xff] %v2150_v1  ;;  %vm321_vm7 = vcmp.lt.f32.partialorder %v2146_v23, %v1886_v20  ;;  %vm324_vm8 = vcmp.lt.f32.partialorder %v2142_v62, %v1886_v20  ;;  %v1355_v5 = vsel %vm337_vm4, 1.0, %v2688_v13  ;;  %vm334_vm9 = vmand %vm292_vm15, %vm322_vm3  ;;  %v2170_v15 = vmul.f32 %v1890_v22, %v452_v3 }
  0xcb   : > { %v2172_v17 = vmul.f32 %v1345_v55, %v411_v7  ;;  %v419_v0 = vmul.f32 %v1900_v26, %v389_v11  ;;  %v1533_v46 = vpack.i.bf16 %v1356_v16, %v1355_v5  ;;  %v1352_v51 = vsel %vm334_vm9, 1.0, %v2688_v13  ;;  %vm333_vm10 = vmand %vm291_vm5, %vm321_vm7 }
  0xcc   : > { %2691 = vst [vmem:[#allocation17_spill] sm:$0xff] %v2170_v15  ;;  %v388_v19 = vsub.f32 %v2146_v23, %v1903_v27  ;;  %v448_v20 = vsub.f32 %v1906_v28, %v2146_v23  ;;  %v1528_v1 = vpack.i.bf16 %v1353_v60, %v1352_v51  ;;  %vm336_vm11 = vmand %vm294_vm6, %vm324_vm8  ;;  %v1351_v18 = vsel %vm333_vm10, 1.0, %v2688_v13 }
  0xcd   : > { %2692 = vst [vmem:[#allocation18_spill] sm:$0xff] %v2172_v17  ;;  %v2181_v22 = vmul.f32 %v1353_v60, %v419_v0  ;;  %v414_v55 = vmul.f32 %v1924_v34, %v384_v21  ;;  %1534 = vrot.lane.b32.xlu0 %v1533_v46, %s1698_s29  ;;  %v1354_v3 = vsel %vm336_vm11, 1.0, %v2688_v13  ;;  %v444_v15 = vsub.f32 %v1930_v36, %v2041_v63 }
  0xce   : > { %v418_v7 = vmul.f32 %v1915_v31, %v388_v19  ;;  %v2188_v11 = vmul.f32 %v1918_v32, %v448_v20  ;;  %1529 = vrot.lane.b32.xlu1 %v1528_v1, %s1698_s29  ;;  %v1538_v17 = vpack.i.bf16 %v1354_v3, %v1351_v18  ;;  %v391_v21 = vsub.f32 %v2142_v62, %v1903_v27 }
  0xcf   : > { %v2194_v60 = vmul.f32 %v2090_v56, %v414_v55  ;;  %v451_v13 = vsub.f32 %v1906_v28, %v2142_v62  ;;  %v2203_v46 = vmul.f32 %v1933_v37, %v444_v15  ;;  %v392_v19 = vsub.f32 %v2107_v44, %v1898_v25 }
  0xd0   : > { %v2200_v0 = vmul.f32 %v1352_v51, %v418_v7  ;;  %v387_v1 = vsub.f32 %v2146_v23, %v1921_v33  ;;  %v421_v56 = vmul.f32 %v1915_v31, %v391_v21  ;;  %v447_v27 = vsub.f32 %v1930_v36, %v2146_v23 }
  0xd1   : > { %v2211_v20 = vmul.f32 %v1918_v32, %v451_v13  ;;  %v390_v28 = vsub.f32 %v2142_v62, %v1921_v33  ;;  %v422_v15 = vmul.f32 %v1900_v26, %v392_v19  ;;  %v450_v25 = vsub.f32 %v1930_v36, %v2142_v62 }
  0xd2   : > { %v417_v51 = vmul.f32 %v1924_v34, %v387_v1  ;;  %v654_v55 = vsub.f32 %v1944_v42, %v2044_v4  ;;  %1539 = vrot.lane.b32.xlu1 %v1538_v17, %s1698_s29  ;;  %v2224_v31 = vmul.f32 %v1355_v5, %v421_v56  ;;  %v2227_v32 = vmul.f32 %v1933_v37, %v447_v27 }
  0xd3   : > { %v420_v7 = vmul.f32 %v1924_v34, %v390_v28  ;;  %v2693_v26 = vsub.f32 %v2011_v24, %v1935_v38  ;;  %v2236_v21 = vmul.f32 %v1356_v16, %v422_v15  ;;  %v2241_v13 = vmul.f32 %v1933_v37, %v450_v25 }
  0xd4   : > { %v2238_v36 = vmul.f32 %v1351_v18, %v417_v51  ;;  %v2244_v5 = vmul.f32 %v1947_v43, %v654_v55  ;;  %v2694_v34 = vsub.f32 %v1939_v40, %v2011_v24  ;;  %v657_v16 = vsub.f32 %v1944_v42, %v2041_v63 }
  0xd5   : > { %v2234_v33 = vmul.f32 %v1937_v39, %v2693_v26  ;;  %v2246_v17 = vmul.f32 %v1354_v3, %v420_v7  ;;  %v594_v18 = vsub.f32 %v2044_v4, %v1953_v47  ;;  %v653_v37 = vsub.f32 %v1956_v48, %v2044_v4 }
  0xd6   : > { %v2252_v19 = vmul.f32 %v1941_v41, %v2694_v34  ;;  %v597_v1 = vsub.f32 %v2041_v63, %v1953_v47  ;;  %v601_v3 = vsub.f32 %v2110_v12, %v1935_v38  ;;  %v661_v24 = vsub.f32 %v1939_v40, %v2110_v12 }
  0xd7   : > { %v2267_v56 = vmul.f32 %v1947_v43, %v657_v16  ;;  %v2270_v27 = vmul.f32 %v1967_v52, %v594_v18  ;;  %v660_v28 = vsub.f32 %v1944_v42, %v2146_v23  ;;  %v593_v15 = vsub.f32 %v2044_v4, %v1959_v49 }
  0xd8   : > { %v2277_v51 = vmul.f32 %v1970_v53, %v653_v37  ;;  %v2280_v25 = vmul.f32 %v1967_v52, %v597_v1  ;;  %v2283_v12 = vmul.f32 %v1937_v39, %v601_v3  ;;  %v2286_v55 = vmul.f32 %v1941_v41, %v661_v24 }
  0xd9   : > { %v2289_v7 = vmul.f32 %v1947_v43, %v660_v28  ;;  %v2292_v26 = vmul.f32 %v1973_v54, %v593_v15  ;;  %v800_v34 = vsub.f32 %v2044_v4, %v1962_v50  ;;  %v656_v16 = vsub.f32 %v1956_v48, %v2041_v63 }
  0xda   : > { %2695 = vst [vmem:[#allocation19_spill] sm:$0xff] %v2286_v55  ;;  %v600_v18 = vsub.f32 %v2146_v23, %v1953_v47  ;;  %v805_v37 = vsub.f32 %v2146_v23, %v1983_v58  ;;  %v604_v1 = vsub.f32 %v2107_v44, %v1935_v38  ;;  %v663_v3 = vsub.f32 %v1944_v42, %v2142_v62 }
  0xdb   : > { %2696 = vst [vmem:[#allocation20_spill] sm:$0xff] %v2289_v7  ;;  %v2307_v24 = vmul.f32 %v1980_v57, %v800_v34  ;;  %v2310_v28 = vmul.f32 %v1970_v53, %v656_v16  ;;  %v664_v15 = vsub.f32 %v1939_v40, %v2107_v44  ;;  %v659_v7 = vsub.f32 %v1956_v48, %v2146_v23 }
  0xdc   : > { %v2317_v55 = vmul.f32 %v1967_v52, %v600_v18  ;;  %v2320_v38 = vmul.f32 %v1986_v59, %v805_v37  ;;  %v2323_v42 = vmul.f32 %v1937_v39, %v604_v1  ;;  %v2326_v34 = vmul.f32 %v1947_v43, %v663_v3 }
  0xdd   : > { %v2329_v16 = vmul.f32 %v1941_v41, %v664_v15  ;;  %v2332_v40 = vmul.f32 %v1970_v53, %v659_v7  ;;  %v596_v44 = vsub.f32 %v2041_v63, %v1959_v49  ;;  %v802_v18 = vsub.f32 %v2041_v63, %v1962_v50 }
  0xde   : > { %v662_v37 = vsub.f32 %v1956_v48, %v2142_v62  ;;  %v603_v39 = vsub.f32 %v2142_v62, %v1953_v47  ;;  %v807_v43 = vsub.f32 %v2142_v62, %v1983_v58  ;;  %v602_v41 = vsub.f32 %v2142_v62, %v1959_v49 }
  0xdf   : > { %2697 = vst [vmem:[#allocation21_spill] sm:$0xff] %v2332_v40  ;;  %v2347_v7 = vmul.f32 %v1973_v54, %v596_v44  ;;  %v2350_v1 = vmul.f32 %v1980_v57, %v802_v18  ;;  %v806_v3 = vsub.f32 %v2142_v62, %v1962_v50  ;;  %v599_v48 = vsub.f32 %v2146_v23, %v1959_v49 }
  0xe0   : > { %v2357_v47 = vmul.f32 %v1970_v53, %v662_v37  ;;  %v2360_v15 = vmul.f32 %v1967_v52, %v603_v39  ;;  %v2363_v40 = vmul.f32 %v1986_v59, %v807_v43  ;;  %v2366_v44 = vmul.f32 %v1973_v54, %v602_v41 }
  0xe1   : > { %2698 = vst [vmem:[#allocation22_spill] sm:$0xff] %v2350_v1  ;;  %v2369_v18 = vmul.f32 %v1980_v57, %v806_v3  ;;  %v2372_v1 = vmul.f32 %v1973_v54, %v599_v48  ;;  %v804_v49 = vsub.f32 %v2146_v23, %v1962_v50  ;;  %v843_v53 = vsub.f32 %v1998_v9, %v2044_v4 }
  0xe2   : > { %v845_v52 = vsub.f32 %v1998_v9, %v2041_v63  ;;  %v842_v37 = vsub.f32 %v2001_v10, %v2044_v4  ;;  %v801_v39 = vsub.f32 %v2044_v4, %v1983_v58  ;;  %v803_v43 = vsub.f32 %v2041_v63, %v1983_v58 }
  0xe3   : > { %v2387_v54 = vmul.f32 %v1980_v57, %v804_v49  ;;  %v2390_v50 = vmul.f32 %v2020_v35, %v843_v53  ;;  %v847_v41 = vsub.f32 %v1998_v9, %v2146_v23  ;;  %v844_v3 = vsub.f32 %v2001_v10, %v2041_v63 }
  0xe4   : > { %v2397_v48 = vmul.f32 %v2020_v35, %v845_v52  ;;  %v2400_v4 = vmul.f32 %v2037_v61, %v842_v37  ;;  %v2403_v58 = vmul.f32 %v1986_v59, %v801_v39  ;;  %v2406_v57 = vmul.f32 %v1986_v59, %v803_v43 }
  0xe5   : > { %v2409_v49 = vmul.f32 %v2020_v35, %v847_v41  ;;  %v2412_v53 = vmul.f32 %v2037_v61, %v844_v3  ;;  %v849_v63 = vsub.f32 %v1998_v9, %v2142_v62  ;;  %v848_v52 = vsub.f32 %v2001_v10, %v2142_v62 }
  0xe6   : > { %2699 = vst [vmem:[#allocation23_spill] sm:$0xff] %v2397_v48  ;;  %2700 = vst [vmem:[#allocation24_spill] sm:$0xff] %v2400_v4  ;;  %v846_v37 = vsub.f32 %v2001_v10, %v2146_v23 }
  0xe7   : > { %2701 = vst [vmem:[#allocation25_spill] sm:$0xff] %v2409_v49  ;;  %2702 = vst [vmem:[#allocation26_spill] sm:$0xff] %v2412_v53  ;;  %v2421_v39 = vmul.f32 %v2020_v35, %v849_v63  ;;  %v2424_v59 = vmul.f32 %v2037_v61, %v848_v52 }
  0xe8   : > { %v2427_v43 = vmul.f32 %v2037_v61, %v846_v37 }
  0xe9   : > { %2703 = vst [vmem:[#allocation27_spill] sm:$0xff] %v2424_v59 }
  0xea   : > { %2704 = vst [vmem:[#allocation28_spill] sm:$0xff] %v2427_v43  ;;  %v2705_v43 = vld [vmem:[#allocation14_spill] sm:$0xff] }
 0x133   : > { %v1520_v41 = vpop.permute.xlu1 %1519 }
 0x134   : > { %v1522_v3 = vunpack.i.h.bf16 %v1520_v41  ;;  %v1521_v53 = vunpack.i.l.bf16 %v1520_v41 }
 0x135   : > { %v1515_v49 = vpop.permute.xlu0 %1514 }
 0x136   : > { %v1517_v9 = vunpack.i.h.bf16 %v1515_v49  ;;  %v1516_v4 = vunpack.i.l.bf16 %v1515_v49  ;;  %v556_v62 = vmul.f32 %v1522_v3, %v2048_v8  ;;  %v534_v48 = vsel %vm263_vm2, %v1521_v53, %v1522_v3 }
 0x137   : > { %v555_v23 = vmul.f32 %v534_v48, %v2114_v45 }
 0x138   : > { %v553_v10 = vmul.f32 %v1517_v9, %v2007_v14  ;;  %v532_v35 = vsel %vm263_vm2, %v1516_v4, %v1517_v9  ;;  %v568_v52 = vadd.f32 %v556_v62, %v2092_v2 }
 0x139   : > { %v1525_v63 = vpop.permute.xlu0 %1524  ;;  %v552_v61 = vmul.f32 %v532_v35, %v2086_v6  ;;  %v567_v49 = vadd.f32 %v555_v23, %v2128_v30  ;;  %v2706_v6 = vld [vmem:[#allocation12_spill] sm:$0xff]  ;;  %v2707_v30 = vld [vmem:[#allocation15_spill] sm:$0xff] }
 0x13a   : > { %v1527_v37 = vunpack.i.h.bf16 %v1525_v63  ;;  %v1526_v41 = vunpack.i.l.bf16 %v1525_v63  ;;  %v565_v59 = vadd.f32 %v553_v10, %v2705_v43  ;;  %v2440_v3 = vmul.f32 %v2234_v33, %v568_v52  ;;  %v2709_v63 = vld [vmem:[#allocation17_spill] sm:$0xff] }
 0x13b   : > { %v564_v8 = vadd.f32 %v552_v61, %v2100_v29  ;;  %v2449_v2 = vmul.f32 %v2280_v25, %v567_v49 }
 0x13c   : > { %v533_v14 = vsel %vm263_vm2, %v1527_v37, %v1521_v53  ;;  %v531_v45 = vsel %vm263_vm2, %v1526_v41, %v1516_v4  ;;  %723 = vrot.lane.b32.xlu1 %v565_v59, %s1698_s29  ;;  %v2446_v48 = vmul.f32 %v2706_v6, %v565_v59  ;;  %v2708_v53 = vld [vmem:[#allocation18_spill] sm:$0xff]  ;;  %v2710_v37 = vld [vmem:[#allocation16_spill] sm:$0xff] }
 0x13d   : > { %721 = vrot.lane.b32.xlu0 %v564_v8, %s1698_s29  ;;  %v551_v43 = vmul.f32 %v531_v45, %v2707_v30  ;;  %v554_v29 = vmul.f32 %v533_v14, %v2203_v46  ;;  %v2455_v33 = vmul.f32 %v2270_v27, %v564_v8 }
 0x13f   : > { %v563_v9 = vadd.f32 %v551_v43, %v2708_v53  ;;  %v566_v4 = vadd.f32 %v554_v29, %v2194_v60  ;;  %v1535_v59 = vpop.permute.xlu0 %1534 }
 0x140   : > { %729 = vrot.lane.b32.xlu1 %v568_v52, %s1698_s29  ;;  %v1530_v62 = vpop.permute.xlu1 %1529  ;;  %v1537_v10 = vunpack.i.h.bf16 %v1535_v59  ;;  %v1536_v25 = vunpack.i.l.bf16 %v1535_v59  ;;  %v1544_v59 = vld [vmem:[#allocation2] sm:$0xff]  }
 0x141   : > { %727 = vrot.lane.b32.xlu0 %v567_v49, %s1698_s29  ;;  %v2462_v35 = vmul.f32 %v2292_v26, %v563_v9  ;;  %v2465_v46 = vmul.f32 %v2347_v7, %v566_v4  ;;  %v1532_v27 = vunpack.i.h.bf16 %v1530_v62  ;;  %v1531_v23 = vunpack.i.l.bf16 %v1530_v62  ;;  %v1545_v62 = vld [vmem:[#allocation2 + $0x48] sm:$0xff]  }
 0x142   : > { %v562_v61 = vmul.f32 %v1537_v10, %v2709_v63  ;;  %v538_v60 = vsel %vm263_vm2, %v1536_v25, %v1537_v10 }
 0x143   : > { %v559_v52 = vmul.f32 %v1532_v27, %v2710_v37  ;;  %v536_v41 = vsel %vm263_vm2, %v1531_v23, %v1532_v27  ;;  %v561_v8 = vmul.f32 %v538_v60, %v2211_v20 }
 0x144   : > { %v1540_v14 = vpop.permute.xlu1 %1539  ;;  %v558_v26 = vmul.f32 %v536_v41, %v2188_v11  ;;  %v574_v7 = vadd.f32 %v562_v61, %v2236_v21 }
 0x145   : > { %719 = vrot.lane.b32.xlu0 %v563_v9, %s1698_s29  ;;  %v1542_v49 = vunpack.i.h.bf16 %v1540_v14  ;;  %v1541_v45 = vunpack.i.l.bf16 %v1540_v14  ;;  %v571_v6 = vadd.f32 %v559_v52, %v2181_v22  ;;  %v573_v30 = vadd.f32 %v561_v8, %v2224_v31  ;;  %v1553_v14 = vld [vmem:[#allocation2 + $0x68] sm:$0xff]  }
 0x146   : > { %v570_v43 = vadd.f32 %v558_v26, %v2200_v0  ;;  %v2479_v29 = vmul.f32 %v2323_v42, %v574_v7  ;;  %v1554_v26 = vld [vmem:[#allocation2 + $0x28] sm:$0xff]  }
 0x147   : > { %v535_v20 = vsel %vm263_vm2, %v1541_v45, %v1531_v23  ;;  %v537_v53 = vsel %vm263_vm2, %v1542_v49, %v1536_v25  ;;  %735 = vrot.lane.b32.xlu1 %v571_v6, %s1698_s29  ;;  %v2485_v11 = vmul.f32 %v2283_v12, %v571_v6  ;;  %v2488_v21 = vmul.f32 %v2360_v15, %v573_v30  ;;  %v1543_v12 = vld [vmem:[#allocation2 + $0x40] sm:$0xff]   ;;  %v2711_v25 = vld [vmem:[#allocation13_spill] sm:$0xff]  ;;  %v2712_v49 = vld [vmem:[#allocation11_spill] sm:$0xff] }
 0x148   : > { %v557_v22 = vmul.f32 %v535_v20, %v2227_v32  ;;  %v560_v0 = vmul.f32 %v537_v53, %v2241_v13  ;;  %v2494_v31 = vmul.f32 %v2317_v55, %v570_v43  ;;  %1399 = vmatprep.subr.bf16.mxu0 %v1543_v12  ;;  %v1546_v13 = vld [vmem:[#allocation2 + $0x8] sm:$0xff]   ;;  %v1549_v55 = vld [vmem:[#allocation2 + $0x58] sm:$0xff]   ;;  %v1371_v45 = vmul.f32 -1.442695, %v2712_v49  ;;  %v1555_v20 = vld [vmem:[#allocation2 + $0x70] sm:$0xff]  }
 0x149   : > { %733 = vrot.lane.b32.xlu0 %v570_v43, %s1698_s29  ;;  %1400 = vmatpush3.bf16.msra.mxu0 %v1544_v59 }
 0x14a   : > { %v569_v42 = vadd.f32 %v557_v22, %v2238_v36  ;;  %v572_v9 = vadd.f32 %v560_v0, %v2246_v17  ;;  %1401 = vmatprep.subr.bf16.mxu0 %v1545_v62  ;;  %v1547_v36 = vld [vmem:[#allocation2 + $0x50] sm:$0xff]   ;;  %1561 = vpow2.f32 %v1371_v45  ;;  %v1557_v0 = vld [vmem:[#allocation2 + $0x80] sm:$0xff]  }
 0x14b   : > { %725 = vrot.lane.b32.xlu1 %v566_v4, %s1698_s29  ;;  %v1548_v17 = vld [vmem:[#allocation2 + $0x10] sm:$0xff]   ;;  %v1552_v4 = vld [vmem:[#allocation2 + $0x20] sm:$0xff]   ;;  %1431 = vmatprep.subr.bf16.mxu1 %v1557_v0 }
 0x14c   : > { %v2501_v15 = vmul.f32 %v2366_v44, %v572_v9  ;;  %v2504_v32 = vmul.f32 %v2372_v1, %v569_v42  ;;  %v1550_v44 = vld [vmem:[#allocation2 + $0x18] sm:$0xff]   ;;  %v1551_v1 = vld [vmem:[#allocation2 + $0x60] sm:$0xff]   ;;  %v1556_v22 = vld [vmem:[#allocation2 + $0x30] sm:$0xff]   ;;  %1432 = vmatpush3.bf16.msra.mxu1 %v1557_v0 }
 0x14d   : > { %739 = vrot.lane.b32.xlu0 %v573_v30, %s1698_s29  ;;  %1402 = vmatpush3.bf16.msra.mxu0 %v1546_v13  ;;  %v2715_v13 = vld [vmem:[#allocation20_spill] sm:$0xff] }
 0x14e   : > { %1403 = vmatprep.subr.bf16.mxu0 %v1547_v36 }
 0x14f   : > { %741 = vrot.lane.b32.xlu1 %v574_v7, %s1698_s29 }
 0x151   : > { %731 = vrot.lane.b32.xlu0 %v569_v42, %s1698_s29  ;;  %1404 = vmatpush3.bf16.msra.mxu0 %v1548_v17  ;;  %v1558_v42 = vld [vmem:[#allocation2 + $0x78] sm:$0xff]   ;;  %v2716_v17 = vld [vmem:[#allocation8_spill] sm:$0xff] }
 0x152   : > { %1405 = vmatprep.subr.bf16.mxu0 %v1549_v55  ;;  %v1369_v55 = vmul.f32 -1.442695, %v2716_v17 }
 0x153   : > { %737 = vrot.lane.b32.xlu1 %v572_v9, %s1698_s29  ;;  %v2714_v9 = vld [vmem:[#allocation19_spill] sm:$0xff] }
 0x155   : > { %1406 = vmatpush3.bf16.msra.mxu0 %v1550_v44 }
 0x156   : > { %1407 = vmatprep.subr.bf16.mxu0 %v1551_v1  ;;  %v1559_v1 = vld [vmem:[#allocation2 + $0x38] sm:$0xff]  }
 0x159   : > { %1408 = vmatpush3.bf16.msra.mxu0 %v1552_v4  ;;  %v2717_v4 = vld [vmem:[#allocation9_spill] sm:$0xff] }
 0x15a   : > { %1409 = vmatprep.subr.bf16.mxu0 %v1553_v14 }
 0x15d   : > { %1410 = vmatpush3.bf16.msra.mxu0 %v1554_v26  ;;  %v2719_v26 = vld [vmem:[#allocation21_spill] sm:$0xff] }
 0x15e   : > { %1411 = vmatprep.subr.bf16.mxu0 %v1555_v20 }
 0x161   : > { %1412 = vmatpush3.bf16.msra.mxu0 %v1556_v22 }
 0x162   : > { %1413 = vmatprep.subr.bf16.mxu0 %v1558_v42  ;;  %v1579_v42 = vld [vmem:[%s1820_s6] sm:$0xff] }
 0x165   : > { %1414 = vmatpush3.bf16.msra.mxu0 %v1559_v1 }
 0x1ae   : > { %v724_v10 = vpop.permute.xlu1 %723 }
 0x1af   : > { %v765_v27 = vmul.f32 %v724_v10, %v2711_v25  ;;  %v722_v23 = vpop.permute.xlu0 %721 }
 0x1b0   : > { %v744_v63 = vsel %vm263_vm2, %v722_v23, %v724_v10  ;;  %v1370_v10 = vmul.f32 -1.442695, %v2717_v4 }
 0x1b1   : > { %v777_v61 = vadd.f32 %v765_v27, %v2446_v48  ;;  %v764_v60 = vmul.f32 %v744_v63, %v2244_v5 }
 0x1b2   : > { %v730_v37 = vpop.permute.xlu1 %729 }
 0x1b3   : > { %v768_v52 = vmul.f32 %v730_v37, %v2252_v19  ;;  %895 = vrot.lane.b32.xlu1 %v777_v61, %s1698_s29  ;;  %v728_v41 = vpop.permute.xlu0 %727  ;;  %v776_v8 = vadd.f32 %v764_v60, %v2455_v33  ;;  %v2713_v19 = vld [vmem:[#allocation10_spill] sm:$0xff]  ;;  %v1562_v60 = vpop.eup %1561 }
 0x1b4   : > { %v746_v7 = vsel %vm263_vm2, %v728_v41, %v730_v37  ;;  %v1372_v30 = vmul.f32 -1.442695, %v2713_v19  ;;  %v961_v49 = vadd.f32 1.0, %v1562_v60 }
 0x1b5   : > { %v780_v6 = vadd.f32 %v768_v52, %v2440_v3  ;;  %v767_v48 = vmul.f32 %v746_v7, %v2267_v56  ;;  %893 = vrot.lane.b32.xlu0 %v776_v8, %s1698_s29  ;;  %v2522_v5 = vmul.f32 %v2403_v58, %v776_v8  ;;  %v2718_v8 = vld [vmem:[#allocation22_spill] sm:$0xff] }
 0x1b6   : > { %1563 = vpow2.f32 %v1372_v30 }
 0x1b7   : > { %901 = vrot.lane.b32.xlu1 %v780_v6, %s1698_s29  ;;  %v720_v33 = vpop.permute.xlu0 %719  ;;  %v779_v43 = vadd.f32 %v767_v48, %v2449_v2  ;;  %1565 = vpow2.f32 %v1369_v55 }
 0x1b8   : > { %v743_v53 = vsel %vm263_vm2, %v720_v33, %v722_v23  ;;  %1567 = vpow2.f32 %v1370_v10 }
 0x1b9   : > { %v763_v56 = vmul.f32 %v743_v53, %v2277_v51  ;;  %899 = vrot.lane.b32.xlu0 %v779_v43, %s1698_s29  ;;  %v2531_v3 = vmul.f32 %v2406_v57, %v779_v43  ;;  %v736_v58 = vpop.permute.xlu1 %735  ;;  %1569 = vrcp.f32 %v961_v49 }
 0x1ba   : > { %v771_v12 = vmul.f32 %v736_v58, %v2714_v9 }
 0x1bb   : > { %v734_v2 = vpop.permute.xlu0 %733  ;;  %v775_v59 = vadd.f32 %v763_v56, %v2462_v35  ;;  %v1560_v35 = vld [vmem:[#allocation2 + $0x88] sm:$0xff]  }
 0x1bc   : > { %v748_v62 = vsel %vm263_vm2, %v734_v2, %v736_v58  ;;  %v783_v51 = vadd.f32 %v771_v12, %v2485_v11  ;;  %1433 = vmatprep.subr.bf16.mxu1 %v1560_v35  ;;  %v1578_v56 = vld [vmem:[%s1820_s6 + $0x18] sm:$0xff]  ;;  %v1580_v12 = vld [vmem:[%s1820_s6 + $0x8] sm:$0xff] }
 0x1bd   : > { %v770_v57 = vmul.f32 %v748_v62, %v2715_v13  ;;  %891 = vrot.lane.b32.xlu0 %v775_v59, %s1698_s29  ;;  %v2540_v36 = vmul.f32 %v2307_v24, %v775_v59  ;;  %v726_v44 = vpop.permute.xlu1 %725  ;;  %1434 = vmatpush3.bf16.msra.mxu1 %v1560_v35  ;;  %v2720_v35 = vld [vmem:[#allocation23_spill] sm:$0xff] }
 0x1be   : > { %v745_v25 = vsel %vm263_vm2, %v726_v44, %v728_v41  ;;  %907 = vrot.lane.b32.xlu1 %v783_v51, %s1698_s29 }
 0x1bf   : > { %v740_v11 = vpop.permute.xlu0 %739  ;;  %v782_v27 = vadd.f32 %v770_v57, %v2494_v31  ;;  %v766_v23 = vmul.f32 %v745_v25, %v2310_v28 }
 0x1c0   : > { %v1564_v28 = vpop.eup %1563 }
 0x1c1   : > { %v2549_v24 = vmul.f32 %v2320_v38, %v782_v27  ;;  %905 = vrot.lane.b32.xlu0 %v782_v27, %s1698_s29  ;;  %v742_v63 = vpop.permute.xlu1 %741  ;;  %v778_v61 = vadd.f32 %v766_v23, %v2465_v46  ;;  %v962_v6 = vadd.f32 1.0, %v1564_v28  ;;  %v2721_v27 = vld [vmem:[#allocation24_spill] sm:$0xff] }
 0x1c2   : > { %v750_v37 = vsel %vm263_vm2, %v740_v11, %v742_v63  ;;  %v774_v52 = vmul.f32 %v742_v63, %v2329_v16 }
 0x1c3   : > { %v732_v31 = vpop.permute.xlu0 %731  ;;  %v773_v41 = vmul.f32 %v750_v37, %v2326_v34  ;;  %897 = vrot.lane.b32.xlu1 %v778_v61, %s1698_s29  ;;  %v2559_v14 = vmul.f32 %v2718_v8, %v778_v61  ;;  %1571 = vrcp.f32 %v962_v6 }
 0x1c4   : > { %v747_v38 = vsel %vm263_vm2, %v732_v31, %v734_v2  ;;  %v786_v46 = vadd.f32 %v774_v52, %v2479_v29 }
 0x1c5   : > { %v769_v7 = vmul.f32 %v747_v38, %v2719_v26  ;;  %v738_v45 = vpop.permute.xlu1 %737  ;;  %v785_v16 = vadd.f32 %v773_v41, %v2488_v21  ;;  %v1566_v21 = vpop.eup %1565 }
 0x1c6   : > { %v749_v48 = vsel %vm263_vm2, %v738_v45, %v740_v11 }
 0x1c7   : > { %v781_v34 = vadd.f32 %v769_v7, %v2504_v32  ;;  %v772_v19 = vmul.f32 %v749_v48, %v2357_v47  ;;  %913 = vrot.lane.b32.xlu1 %v786_v46, %s1698_s29  ;;  %v878_v30 = vmul.f32 %v2363_v40, %v785_v16  ;;  %911 = vrot.lane.b32.xlu0 %v785_v16, %s1698_s29  ;;  %v1568_v40 = vpop.eup %1567  ;;  %v959_v32 = vadd.f32 1.0, %v1566_v21 }
 0x1c8   : > { %v960_v43 = vadd.f32 1.0, %v1568_v40 }
 0x1c9   : > { %v2571_v29 = vmul.f32 %v2387_v54, %v781_v34  ;;  %v784_v33 = vadd.f32 %v772_v19, %v2501_v15  ;;  %1573 = vrcp.f32 %v959_v32  ;;  %v1570_v54 = vpop.eup %1569  ;;  %v1577_v15 = vld [vmem:[%s1820_s6 + $0x10] sm:$0xff]  ;;  %s198_s6 = sand.u32 1, %s1675_s13  }
 0x1ca   : > { %1575 = vrcp.f32 %v960_v43  ;;  %v973_v53 = vmul.f32 %v1577_v15, %v1570_v54  ;;  %s2614_s11 = scalar_lea.sflag [#allocation4], %s198_s6 }
 0x1cb   : > { %909 = vrot.lane.b32.xlu1 %v784_v33, %s1698_s29  ;;  %v877_v47 = vmul.f32 %v2369_v18, %v784_v33  ;;  %903 = vrot.lane.b32.xlu0 %v781_v34, %s1698_s29  ;;  %v2724_v34 = vld [vmem:[#allocation27_spill] sm:$0xff]  ;;  %v2725_v33 = vld [vmem:[#allocation28_spill] sm:$0xff]  ;;  %s1341_s29 = sshll.u32 %s198_s6, 5 }
 0x1cc   : > { %s200_s26 = scalar_lea.vmem [#allocation5], %s1341_s29 }
 0x1cd   : > { %v1572_v20 = vpop.eup %1571  ;;  %s1248_s27 = sshll.u32 %s200_s26, 4  ;;  %s2607_s27 = int_to_ptr.vmem [resolvable:$true] %s1248_s27 }
 0x1ce   : > { %v974_v58 = vmul.f32 %v1578_v56, %v1572_v20  ;;  %s1609_s18 = scalar_lea.vmem %s2607_s27, 512  ;;  %p1616_p1 = scmp.lt.s32.totalorder %s2607_s27, %s1614_s19 }
 0x1cf   : > { %p1610_p8 = scmp.ne.s32.totalorder %s2607_s27, %s1609_s18  ;;  %p1617_p3 = scmp.lt.s32.totalorder %s1615_s21, %s1609_s18 }
 0x1d0   : > { %v980_v2 = vpack.c.bf16 %v974_v58, %v973_v53 }
 0x1d1   : > { %p1611_p11 = pnand %p1610_p8, %p2726_p10  ;;  %p1618_p5 = por %p1617_p3, %p1616_p1 }
 0x1d3   : > { %v1574_v22 = vpop.eup %1573  ;;  %p1612_p13 = pneg %p1611_p11 }
 0x1d4   : > { %v1576_v0 = vpop.eup %1575  ;;  %v971_v9 = vmul.f32 %v1579_v42, %v1574_v22 }
 0x1d5   : > { %v972_v18 = vmul.f32 %v1580_v12, %v1576_v0  ;;  %p1619_p6 = pnand %p1618_p5, %p1612_p13 }
 0x1d7   : > { %v977_v59 = vpack.c.bf16 %v972_v18, %v971_v9 }
 0x1d9   : > { %1435 = vmatprep.mubr.msk.bf16.mxu1 %vm253_vm0, %v977_v59 }
 0x1da   : > { %1436 = vmatmul.mubr.msk.bf16.vlgmr.msra.gmra.mrb[0].mxu1 %vm253_vm0, %v980_v2 }
 0x225   : > { %v896_v62 = vpop.permute.xlu1 %895 }
 0x227   : > { %v894_v51 = vpop.permute.xlu0 %893 }
 0x228   : > { %v916_v13 = vsel %vm263_vm2, %v894_v51, %v896_v62 }
 0x229   : > { %v932_v57 = vmul.f32 %v916_v13, %v2390_v50  ;;  %v902_v17 = vpop.permute.xlu1 %901 }
 0x22b   : > { %v900_v55 = vpop.permute.xlu0 %899  ;;  %v940_v44 = vadd.f32 %v932_v57, %v2522_v5  ;;  %v2722_v5 = vld [vmem:[#allocation25_spill] sm:$0xff] }
 0x22c   : > { %v918_v1 = vsel %vm263_vm2, %v900_v55, %v902_v17 }
 0x22d   : > { %v934_v4 = vmul.f32 %v918_v1, %v2720_v35 }
 0x22f   : > { %v892_v10 = vpop.permute.xlu0 %891  ;;  %v942_v25 = vadd.f32 %v934_v4, %v2531_v3  ;;  %v2723_v3 = vld [vmem:[#allocation26_spill] sm:$0xff] }
 0x230   : > { %v915_v11 = vsel %vm263_vm2, %v892_v10, %v894_v51  ;;  %v908_v63 = vpop.permute.xlu1 %907 }
 0x231   : > { %v931_v23 = vmul.f32 %v915_v11, %v2721_v27  ;;  %v976_v61 = vpack.c.bf16 %v942_v25, %v940_v44 }
 0x233   : > { %v939_v60 = vadd.f32 %v931_v23, %v2540_v36  ;;  %1163 = vmatprep.mubr.bf16.mxu0 %v976_v61  ;;  %v906_v50 = vpop.permute.xlu0 %905 }
 0x234   : > { %v920_v37 = vsel %vm263_vm2, %v906_v50, %v908_v63 }
 0x235   : > { %v936_v52 = vmul.f32 %v920_v37, %v2722_v5  ;;  %v898_v31 = vpop.permute.xlu1 %897 }
 0x236   : > { %v917_v41 = vsel %vm263_vm2, %v898_v31, %v900_v55 }
 0x237   : > { %v944_v28 = vadd.f32 %v936_v52, %v2549_v24  ;;  %v933_v38 = vmul.f32 %v917_v41, %v2723_v3 }
 0x239   : > { %v941_v8 = vadd.f32 %v933_v38, %v2559_v14  ;;  %v914_v46 = vpop.permute.xlu1 %913  ;;  %v912_v26 = vpop.permute.xlu0 %911 }
 0x23a   : > { %v922_v7 = vsel %vm263_vm2, %v912_v26, %v914_v46 }
 0x23b   : > { %v938_v36 = vmul.f32 %v922_v7, %v2421_v39  ;;  %v975_v49 = vpack.c.bf16 %v941_v8, %v939_v60 }
 0x23d   : > { %v946_v45 = vadd.f32 %v938_v36, %v878_v30  ;;  %v910_v16 = vpop.permute.xlu1 %909  ;;  %v904_v6 = vpop.permute.xlu0 %903  ;;  %1164 = vmatmul.mubr.bf16.vlgmr.msra.gmra.mrb[0].mxu0 %v975_v49 }
 0x23e   : > { %v921_v24 = vsel %vm263_vm2, %v910_v16, %v912_v26  ;;  %v919_v48 = vsel %vm263_vm2, %v904_v6, %v906_v50 }
 0x23f   : > { %v937_v19 = vmul.f32 %v921_v24, %v2724_v34  ;;  %v935_v14 = vmul.f32 %v919_v48, %v2725_v33  ;;  %v979_v21 = vpack.c.bf16 %v946_v45, %v944_v28 }
 0x241   : > { %v945_v40 = vadd.f32 %v937_v19, %v877_v47  ;;  %v943_v32 = vadd.f32 %v935_v14, %v2571_v29  ;;  %1171 = vmatprep.mubr.bf16.mxu0 %v979_v21 }
 0x243   : > { %v978_v39 = vpack.c.bf16 %v945_v40, %v943_v32 }
 0x245   : > { %1172 = vmatmul.mubr.bf16.gmra.mrb[4].mxu0 %v978_v39 }
 0x2ad   : > { %v1437_v30 = vpop.f32.mrb[0].mxu1 }
 0x2ae   : > { %v1214_v43 = vpop.f32.mrb[1].mxu1 }
 0x2af   : > { %v1438_v54 = vpop.f32.mrb[2].mxu1 }
 0x2b0   : > { %v1217_v20 = vpop.f32.mrb[3].mxu1 }
 0x310   : > { %v1415_v15 = vpop.f32.mrb[0].mxu0 }
 0x311   : > { %v1416_v53 = vpop.f32.mrb[1].mxu0 }
 0x312   : > { %v1417_v56 = vadd.f32 %v1416_v53, %v1415_v15  ;;  %v1418_v58 = vpop.f32.mrb[2].mxu0 }
 0x313   : > { %v1419_v22 = vpop.f32.mrb[3].mxu0 }
 0x314   : > { %v1420_v0 = vadd.f32 %v1419_v22, %v1418_v58  ;;  %v1215_v42 = vadd.f32 %v1417_v56, %v1214_v43 }
 0x316   : > { %1229 = vst [vmem:[%s200_s26] sm:$0xff] %v1215_v42  ;;  %v1218_v29 = vadd.f32 %v1420_v0, %v1217_v20 }
 0x318   : > { %1230 = vst [vmem:[%s200_s26 + $0x8] sm:$0xff] %v1218_v29  ;;  %v1421_v47 = vpop.f32.mrb[4].mxu0 }
 0x319   : > { %v1422_v9 = vpop.f32.mrb[5].mxu0 }
 0x31a   : > { %v1423_v12 = vadd.f32 %v1422_v9, %v1421_v47  ;;  %v1424_v18 = vpop.f32.mrb[6].mxu0 }
 0x31b   : > { %v1425_v2 = vpop.f32.mrb[7].mxu0 }
 0x31c   : > { %v1223_v59 = vadd.f32 %v1437_v30, %v1423_v12  ;;  %v1426_v62 = vadd.f32 %v1425_v2, %v1424_v18 }
 0x31e   : > { %1231 = vst [vmem:[%s200_s26 + $0x10] sm:$0xff] %v1223_v59  ;;  %v1226_v51 = vadd.f32 %v1438_v54, %v1426_v62 }
 0x320   : > { %1232 = vst [vmem:[%s200_s26 + $0x18] sm:$0xff] %v1226_v51 }
 0x321   : > { %1622 = shalt.err (!%p1619_p6)
}
 0x322   : > { %s1623_s23 = scalar_lea.hbm %s2612_s10, 512  ;;  %s1627_s5 = scalar_lea.hbm %s2663_s3, 1536 }
 0x323   : > { %p1624_p7 = scmp.ne.s32.totalorder %s2612_s10, %s1623_s23  ;;  %p1628_p0 = scmp.lt.u32.totalorder %s2612_s10, %s2663_s3 }
 0x324   : > { %p1629_p2 = scmp.lt.u32.totalorder %s1627_s5, %s1623_s23  ;;  %p1631_p8 = scmp.lt.u32.totalorder %s1623_s23, %s2612_s10 }
 0x325   : > { %p1625_p9 = pnand %p1624_p7, %p2726_p10 }
 0x326   : > { %p1630_p4 = por %p1629_p2, %p1628_p0 }
 0x327   : > { %p1626_p12 = pneg %p1625_p9 }
 0x328   : > { %p1632_p11 = por %p1631_p8, %p1630_p4 }
 0x32a   : > { %p1633_p13 = pnand %p1632_p11, %p1626_p12 }
 0x32c   : > { %1636 = shalt.err (!%p1633_p13)
}
 0x32d   : > { %s1701_s29 = smov 128   ;;  %s1702_s26 = smov 8  }
 0x32e   : > { %1443 = dma.vmem_to_hbm [thread:$0]  (%p2726_p10), %s2607_s27, 512, %s2612_s10, %s2614_s11, %s1701_s29, %s1701_s29, %s1702_s26  }
 0x32f PF: > { %p1455_p1 = scmp.ge.s32.totalorder %s1691_s17, 2  ;;  %s1263_s7 = sand.u32 1, %s1671_s12  }
 0x330   : > { %p2727_p3 = scmp.ne.s32.totalorder %s2675_s24, 0  ;;  %s1264_s8 = scalar_lea.sflag [#allocation4], %s1263_s7 }
 0x332   : > { %p1450_p5 = pnand %p1455_p1, %p2727_p3 }
 0x334   : > { %1666 = dma.done.wait (!%p1450_p5), %s1264_s8, 512  }
 0x335   : > { %1668 = vsyncadd (!%p1450_p5), %s1264_s8, 4294966784  ;;  %s17_s17 = sadd.s32 1, %s1691_s17   ;;  %s2728_s12 = smov %s1675_s13 }
 0x336   : > { %p14_p6 = scmp.ge.s32.totalorder %s17_s17, 5   ;;  %s2729_s13 = smov %s1679_s14 }
 0x337   : > { %s2730_s14 = smov %s1776_s25  ;;  %s2731_s15 = smov %s1687_s16 }
 0x338   : > { %s2732_s16 = smov %s2734_s20  ;;  %16 = sbr.rel (!%p14_p6) target bundleno = 5 (0x5), region = 86 }
 0x33f   :  { %1269 = vsyncpa [#allocation3], 1 }
 0x340   :  { %1271 = vsyncpa [#allocation3 + $0x1], 1 }
 0x341   :  { %1272 = vsyncpa [#allocation4], 1 }
 0x342   :  { %1274 = vsyncpa [#allocation4 + $0x1], 1 }

</bundles_post_ra>
